<compile_context>
chip_gen: v6e
topology: v6e:2x2x1
jax: 0.10.0
libtpu: 0.0.40
codegen_flags: <defaults>
</compile_context>

<pallas_src>
import functools

import jax
import jax.numpy as jnp
from jax.experimental import pallas as pl
from jax.experimental.pallas import tpu as pltpu

FPAD = 128           # padded hidden width (lane dim)
TM_CAP = 1024        # max batch-tile rows

D_IN, H1, H2, D_OUT = 1, 50, 20, 1
NEG_SLOPE = 0.01     # nn.LeakyReLU default


def _mlp_kernel(x_ref, w1_ref, b1_ref, w2_ref, b2_ref, w3_ref, b3_ref, o_ref):
    x = x_ref[...]                                   # (TM, 1)

    # Layer 1: Linear(1, 50) as a VPU broadcast (rank-1 weight; skip the MXU).
    h = x * w1_ref[...] + b1_ref[...]                # (TM, FPAD); pad lanes stay 0
    h = jnp.maximum(h, NEG_SLOPE * h)                # LeakyReLU

    # Layer 2: Linear(50, 20) on the MXU.
    h = jnp.dot(h, w2_ref[...], preferred_element_type=jnp.float32) + b2_ref[...]
    h = jnp.maximum(h, NEG_SLOPE * h)                # LeakyReLU

    # Layer 3: Linear(20, 1) as a lane reduce (output width 1).
    y = jnp.sum(h * w3_ref[...], axis=-1, keepdims=True) + b3_ref[...]   # (TM, 1)
    o_ref[...] = jax.nn.sigmoid(y).astype(o_ref.dtype)


def _round_up(n, m):
    return ((n + m - 1) // m) * m


def _choose_tm(B):
    """Pick a batch tile: big tiles (per-step overhead ~0.35us), but keep
    >= 4 grid steps when the batch allows it so v7x can use both TCs."""
    b8 = _round_up(max(B, 1), 8)
    if b8 <= 32:
        return b8                          # tiny batch: one tile
    return min(TM_CAP, _round_up(pl.cdiv(b8, 4), 8))


def _pad2(w, rows, cols):
    out = jnp.zeros((rows, cols), jnp.float32)
    return out.at[: w.shape[0], : w.shape[1]].set(w)


def init_params(key):
    """Deterministic params mimicking torch.nn.Linear default init."""
    ks = jax.random.split(key, 6)

    def linear(kw, kb, fan_in, fan_out):
        bound = 1.0 / jnp.sqrt(jnp.float32(fan_in))
        w = jax.random.uniform(kw, (fan_in, fan_out), jnp.float32, -bound, bound)
        b = jax.random.uniform(kb, (fan_out,), jnp.float32, -bound, bound)
        return w, b

    w1, b1 = linear(ks[0], ks[1], D_IN, H1)
    w2, b2 = linear(ks[2], ks[3], H1, H2)
    w3, b3 = linear(ks[4], ks[5], H2, D_OUT)
    return (w1, b1, w2, b2, w3, b3)


def pad_params(params):
    """One-time padding of weights/biases to lane-dense slabs (done at init,
    NOT per forward)."""
    w1, b1, w2, b2, w3, b3 = params
    w1_p = _pad2(w1, 1, FPAD)                 # (1, 128)  row vector of Linear(1,50)
    b1_p = _pad2(b1[None, :], 1, FPAD)        # (1, 128)
    w2_p = _pad2(w2, FPAD, FPAD)              # (128, 128)
    b2_p = _pad2(b2[None, :], 1, FPAD)        # (1, 128)
    w3_p = _pad2(w3.T, 1, FPAD)               # (1, 128)  column of Linear(20,1) as row
    b3_p = b3.reshape(1, 1).astype(jnp.float32)   # (1, 1)
    return (w1_p, b1_p, w2_p, b2_p, w3_p, b3_p)


@functools.partial(jax.jit, static_argnames=())
def discriminator_forward(x, padded_params):
    """x: (B, 1) float32 -> (B, 1) float32 in (0, 1)."""
    w1_p, b1_p, w2_p, b2_p, w3_p, b3_p = padded_params
    B = x.shape[0]
    TM = _choose_tm(B)
    B_pad = _round_up(B, TM)

    x_p = x if B_pad == B else jnp.pad(x, ((0, B_pad - B), (0, 0)))

    grid = (B_pad // TM,)
    io_spec = pl.BlockSpec((TM, 1), lambda i: (i, 0))          # width-1 I/O
    row_spec = pl.BlockSpec((1, FPAD), lambda i: (0, 0))
    w2_spec = pl.BlockSpec((FPAD, FPAD), lambda i: (0, 0))
    b3_spec = pl.BlockSpec((1, 1), lambda i: (0, 0))

    out = pl.pallas_call(
        _mlp_kernel,
        out_shape=jax.ShapeDtypeStruct((B_pad, 1), jnp.float32),
        grid_spec=pltpu.PrefetchScalarGridSpec(
            num_scalar_prefetch=0,
            grid=grid,
            in_specs=[io_spec, row_spec, row_spec, w2_spec, row_spec,
                      row_spec, b3_spec],
            out_specs=io_spec,
        ),
        compiler_params=pltpu.CompilerParams(
            dimension_semantics=("parallel",)),
    )(x_p, w1_p, b1_p, w2_p, b2_p, w3_p, b3_p)

    return out[:B] if B_pad != B else out


def _reference_forward(x, params):
    w1, b1, w2, b2, w3, b3 = params
    h = x @ w1 + b1
    h = jnp.where(h > 0, h, NEG_SLOPE * h)
    h = h @ w2 + b2
    h = jnp.where(h > 0, h, NEG_SLOPE * h)
    h = h @ w3 + b3
    return jax.nn.sigmoid(h)


if __name__ == "__main__":
    key = jax.random.PRNGKey(0)
    k_param, k_x = jax.random.split(key)

    params = init_params(k_param)
    padded_params = pad_params(params)          # one-time, outside forward path

    x = jax.random.normal(k_x, (8, 1), jnp.float32)   # batch of scalar samples

    y = discriminator_forward(x, padded_params)
    jax.block_until_ready(y)

    y_ref = _reference_forward(x, params)
    assert y.shape == (8, 1)
    assert jnp.allclose(y, y_ref, atol=1e-5, rtol=1e-5)

    # Also exercise a larger / ragged batch to cover the multi-tile grid path.
    x_big = jax.random.normal(k_x, (1000, 1), jnp.float32)
    y_big = discriminator_forward(x_big, padded_params)
    jax.block_until_ready(y_big)
    assert y_big.shape == (1000, 1)
    assert jnp.allclose(y_big, _reference_forward(x_big, params), atol=1e-5, rtol=1e-5)

    print("KERNEL_OK")
</pallas_src>

<mosaic_0001>
module attributes {stable_mosaic.version = 11 : i64} {
  func.func @_mlp_kernel(%arg0: i32, %arg1: memref<8x1xf32, #tpu.memory_space<vmem>>, %arg2: memref<1x128xf32, #tpu.memory_space<vmem>>, %arg3: memref<1x128xf32, #tpu.memory_space<vmem>>, %arg4: memref<128x128xf32, #tpu.memory_space<vmem>>, %arg5: memref<1x128xf32, #tpu.memory_space<vmem>>, %arg6: memref<1x128xf32, #tpu.memory_space<vmem>>, %arg7: memref<1x1xf32, #tpu.memory_space<vmem>>, %arg8: memref<8x1xf32, #tpu.memory_space<vmem>>) attributes {dimension_semantics = [#tpu.dimension_semantics<parallel>], iteration_bounds = array<i64: 1>, scalar_prefetch = 0 : i64, scratch_operands = 0 : i64, tpu.core_type = #tpu.core_type<tc>, window_params = [{transform_indices = @transform_0, window_bounds = array<i64: 8, 1>}, {pipeline_mode = #tpu.pipeline_mode<synchronous>, transform_indices = @transform_1, window_bounds = array<i64: 1, 128>}, {pipeline_mode = #tpu.pipeline_mode<synchronous>, transform_indices = @transform_2, window_bounds = array<i64: 1, 128>}, {pipeline_mode = #tpu.pipeline_mode<synchronous>, transform_indices = @transform_3, window_bounds = array<i64: 128, 128>}, {pipeline_mode = #tpu.pipeline_mode<synchronous>, transform_indices = @transform_4, window_bounds = array<i64: 1, 128>}, {pipeline_mode = #tpu.pipeline_mode<synchronous>, transform_indices = @transform_5, window_bounds = array<i64: 1, 128>}, {pipeline_mode = #tpu.pipeline_mode<synchronous>, transform_indices = @transform_6, window_bounds = array<i64: 1, 1>}, {transform_indices = @transform_7, window_bounds = array<i64: 8, 1>}]} {
    %c0 = arith.constant 0 : index
    %c0_0 = arith.constant 0 : index
    %0 = vector.load %arg1[%c0, %c0_0] : memref<8x1xf32, #tpu.memory_space<vmem>>, vector<8x1xf32>
    %c0_1 = arith.constant 0 : index
    %c0_2 = arith.constant 0 : index
    %1 = vector.load %arg2[%c0_1, %c0_2] : memref<1x128xf32, #tpu.memory_space<vmem>>, vector<1x128xf32>
    %2 = vector.broadcast %0 : vector<8x1xf32> to vector<8x128xf32>
    %3 = vector.broadcast %1 : vector<1x128xf32> to vector<8x128xf32>
    %4 = arith.mulf %2, %3 : vector<8x128xf32>
    %c0_3 = arith.constant 0 : index
    %c0_4 = arith.constant 0 : index
    %5 = vector.load %arg3[%c0_3, %c0_4] : memref<1x128xf32, #tpu.memory_space<vmem>>, vector<1x128xf32>
    %6 = vector.broadcast %5 : vector<1x128xf32> to vector<8x128xf32>
    %7 = arith.addf %4, %6 : vector<8x128xf32>
    %cst = arith.constant 0.00999999977 : f32
    %8 = vector.broadcast %cst : f32 to vector<8x128xf32>
    %9 = arith.mulf %8, %7 : vector<8x128xf32>
    %10 = arith.maximumf %7, %9 : vector<8x128xf32>
    %c0_5 = arith.constant 0 : index
    %c0_6 = arith.constant 0 : index
    %11 = vector.load %arg4[%c0_5, %c0_6] : memref<128x128xf32, #tpu.memory_space<vmem>>, vector<128x128xf32>
    %cst_7 = arith.constant dense<0.000000e+00> : vector<8x128xf32>
    %12 = tpu.matmul %10, %11, %cst_7 {dimension_numbers = #tpu.dot_dimension_numbers<[1], [0], [0], [1], [0, 0, 1, 1], [], []>} : vector<8x128xf32>, vector<128x128xf32>, vector<8x128xf32> -> vector<8x128xf32>
    %c0_8 = arith.constant 0 : index
    %c0_9 = arith.constant 0 : index
    %13 = vector.load %arg5[%c0_8, %c0_9] : memref<1x128xf32, #tpu.memory_space<vmem>>, vector<1x128xf32>
    %14 = vector.broadcast %13 : vector<1x128xf32> to vector<8x128xf32>
    %15 = arith.addf %12, %14 : vector<8x128xf32>
    %cst_10 = arith.constant 0.00999999977 : f32
    %16 = vector.broadcast %cst_10 : f32 to vector<8x128xf32>
    %17 = arith.mulf %16, %15 : vector<8x128xf32>
    %18 = arith.maximumf %15, %17 : vector<8x128xf32>
    %c0_11 = arith.constant 0 : index
    %c0_12 = arith.constant 0 : index
    %19 = vector.load %arg6[%c0_11, %c0_12] : memref<1x128xf32, #tpu.memory_space<vmem>>, vector<1x128xf32>
    %20 = vector.broadcast %19 : vector<1x128xf32> to vector<8x128xf32>
    %21 = arith.mulf %18, %20 : vector<8x128xf32>
    %cst_13 = arith.constant dense<0.000000e+00> : vector<8xf32>
    %22 = vector.multi_reduction <add>, %21, %cst_13 [1] : vector<8x128xf32> to vector<8xf32>
    %23 = vector.shape_cast %22 : vector<8xf32> to vector<8x1xf32>
    %c0_14 = arith.constant 0 : index
    %c0_15 = arith.constant 0 : index
    %24 = vector.load %arg7[%c0_14, %c0_15] : memref<1x1xf32, #tpu.memory_space<vmem>>, vector<1x1xf32>
    %25 = vector.broadcast %24 : vector<1x1xf32> to vector<8x1xf32>
    %26 = arith.addf %23, %25 : vector<8x1xf32>
    %27 = arith.negf %26 : vector<8x1xf32>
    %28 = math.exp %27 : vector<8x1xf32>
    %cst_16 = arith.constant 1.000000e+00 : f32
    %29 = vector.broadcast %cst_16 : f32 to vector<8x1xf32>
    %30 = arith.addf %29, %28 : vector<8x1xf32>
    %31 = arith.divf %29, %30 : vector<8x1xf32>
    %c0_17 = arith.constant 0 : index
    %c0_18 = arith.constant 0 : index
    %32 = vector.load %arg8[%c0_17, %c0_18] : memref<8x1xf32, #tpu.memory_space<vmem>>, vector<8x1xf32>
    tpu.vector_store %arg8[%c0_17, %c0_18], %31 {strides = array<i32>} : memref<8x1xf32, #tpu.memory_space<vmem>>, vector<8x1xf32>,
    return
  }
  func.func @transform_0(%arg0: i32) -> (i32, i32) {
    %c0_i32 = arith.constant 0 : i32
    %c0_i32_0 = arith.constant 0 : i32
    return %arg0, %c0_i32 : i32, i32
  }
  func.func @transform_1(%arg0: i32) -> (i32, i32) {
    %c0_i32 = arith.constant 0 : i32
    %c0_i32_0 = arith.constant 0 : i32
    %c0_i32_1 = arith.constant 0 : i32
    return %c0_i32, %c0_i32_0 : i32, i32
  }
  func.func @transform_2(%arg0: i32) -> (i32, i32) {
    %c0_i32 = arith.constant 0 : i32
    %c0_i32_0 = arith.constant 0 : i32
    %c0_i32_1 = arith.constant 0 : i32
    return %c0_i32, %c0_i32_0 : i32, i32
  }
  func.func @transform_3(%arg0: i32) -> (i32, i32) {
    %c0_i32 = arith.constant 0 : i32
    %c0_i32_0 = arith.constant 0 : i32
    %c0_i32_1 = arith.constant 0 : i32
    return %c0_i32, %c0_i32_0 : i32, i32
  }
  func.func @transform_4(%arg0: i32) -> (i32, i32) {
    %c0_i32 = arith.constant 0 : i32
    %c0_i32_0 = arith.constant 0 : i32
    %c0_i32_1 = arith.constant 0 : i32
    return %c0_i32, %c0_i32_0 : i32, i32
  }
  func.func @transform_5(%arg0: i32) -> (i32, i32) {
    %c0_i32 = arith.constant 0 : i32
    %c0_i32_0 = arith.constant 0 : i32
    %c0_i32_1 = arith.constant 0 : i32
    return %c0_i32, %c0_i32_0 : i32, i32
  }
  func.func @transform_6(%arg0: i32) -> (i32, i32) {
    %c0_i32 = arith.constant 0 : i32
    %c0_i32_0 = arith.constant 0 : i32
    %c0_i32_1 = arith.constant 0 : i32
    return %c0_i32, %c0_i32_0 : i32, i32
  }
  func.func @transform_7(%arg0: i32) -> (i32, i32) {
    %c0_i32 = arith.constant 0 : i32
    %c0_i32_0 = arith.constant 0 : i32
    return %arg0, %c0_i32 : i32, i32
  }
}

</mosaic_0001>

<bundles_post_ra>
// kernel: discriminator_forward.1
= control target key start
LH: loop header
LB: loop body
LE: loop exit
PB: predicated region body
PF: predicated region fallthrough
CT: control target
= control target key end

     0   :  { %s353_s0 = inlined_call_operand.vmem [shape: f32[8,1], index: 0, kind: input, shape index: {}]   ;;  %s354_s1 = inlined_call_operand.vmem [shape: f32[1,128], index: 1, kind: input, shape index: {}]   ;;  %s355_s2 = inlined_call_operand.vmem [shape: f32[1,128], index: 2, kind: input, shape index: {}]   ;;  %s356_s3 = inlined_call_operand.hbm [shape: f32[128,128], index: 3, kind: input, shape index: {}]   ;;  %s357_s4 = inlined_call_operand.vmem [shape: f32[1,128], index: 4, kind: input, shape index: {}]   ;;  %s358_s5 = inlined_call_operand.vmem [shape: f32[1,128], index: 5, kind: input, shape index: {}]   ;;  %s359_s6 = inlined_call_operand.<no memory space> [shape: f32[1,1], index: 6, kind: input, shape index: {}]   ;;  %s360_s7 = inlined_call_operand.vmem [shape: f32[8,1], index: 7, kind: output, shape index: {}]  }
   0x1   :  { %v12_v0 = vstv %s359_s6 }
   0x2   :  { %13 = vst [vmem:[#allocation2] sm:$0x1] %v12_v0 }
   0x3   :  { %14 = vsyncpa [#allocation4], 0  ;;  %s283_s26 = smov [#allocation3]  }
   0x4   :  { %s26_s27 = sshll.u32 %s283_s26, 4  ;;  %s27_s27 = int_to_ptr.vmem [resolvable:$true] %s26_s27 }
   0x5   :  { %s269_s28 = scalar_lea.vmem %s27_s27, 2048  ;;  %p274_p1 = scmp.lt.s32.totalorder %s27_s27, %s27_s27 }
   0x6   :  { %p270_p0 = scmp.ne.s32.totalorder %s27_s27, %s269_s28  ;;  %p275_p2 = scmp.lt.s32.totalorder %s269_s28, %s269_s28 }
   0x8   :  { %p276_p3 = por %p275_p2, %p274_p1 }
   0xa   :  { %p277_p4 = pnand %p276_p3, %p270_p0 }
   0xc   :  { %280 = shalt.err (!%p277_p4)
}
   0xd   :  { %s284_s29 = smov 128   ;;  %s285_s30 = smov 8  }
   0xe   :  { %32 = dma.hbm_to_vmem [thread:$0]  %s356_s3, 2048, %s27_s27, [#allocation4], %s284_s29, %s284_s29, %s285_s30  }
   0xf   :  { %281 = dma.done.wait [#allocation4], 2048  }
  0x10   :  { %282 = vsyncadd [#allocation4], 4294965248  ;;  %v286_v1 = vmov 0   ;;  %v287_v2 = vmov 0.0   ;;  %v42_v3 = vld [vmem:[%s353_s0] sm:$0xff]  ;;  %v80_v5 = vld [vmem:[#allocation3 + $0x70] sm:$0xff] }
  0x11   :  { %256 = vset.pattern.permute.xlu0 %v286_v1  ;;  %215 = vmatprep.subr.mxu0 %v287_v2  ;;  %v81_v4 = vld [vmem:[#allocation3 + $0x78] sm:$0xff]  ;;  %v79_v6 = vld [vmem:[#allocation3 + $0x68] sm:$0xff]  ;;  %vm288_vm0 = vmmov 0   ;;  %v78_v7 = vld [vmem:[#allocation3 + $0x60] sm:$0xff]  ;;  %vm185_vm1 = vcmask 7168  }
  0x12   :  { %46 = vperm.xlu0 %256, %v42_v3   ;;  %216 = vmatpush3.msra.mxu0 %v81_v4  ;;  %v77_v8 = vld [vmem:[#allocation3 + $0x58] sm:$0xff]  ;;  %v76_v9 = vld [vmem:[#allocation3 + $0x50] sm:$0xff]  ;;  %v75_v10 = vld [vmem:[#allocation3 + $0x48] sm:$0xff] }
  0x13   :  { %217 = vmatprep.subr.mxu0 %v287_v2  ;;  %247 = vmatprep.mubr.msk.f32.mxu0 %vm288_vm0, %v287_v2  ;;  %v74_v11 = vld [vmem:[#allocation3 + $0x40] sm:$0xff]  ;;  %v73_v12 = vld [vmem:[#allocation3 + $0x38] sm:$0xff]  ;;  %v72_v13 = vld [vmem:[#allocation3 + $0x30] sm:$0xff] }
  0x14   :  { %218 = vmatpush3.msra.mxu0 %v80_v5  ;;  %v71_v14 = vld [vmem:[#allocation3 + $0x28] sm:$0xff]  ;;  %v70_v15 = vld [vmem:[#allocation3 + $0x20] sm:$0xff]  ;;  %v69_v16 = vld [vmem:[#allocation3 + $0x18] sm:$0xff] }
  0x15   :  { %219 = vmatprep.subr.mxu0 %v287_v2  ;;  %v68_v17 = vld [vmem:[#allocation3 + $0x10] sm:$0xff]  ;;  %v67_v18 = vld [vmem:[#allocation3 + $0x8] sm:$0xff]  ;;  %v66_v19 = vld [vmem:[#allocation3] sm:$0xff] }
  0x16   :  { %220 = vmatpush3.msra.mxu0 %v79_v6  ;;  %v192_v20 = vld [vmem:[%s354_s1] ss:$0 sm:$0xff] }
  0x17   :  { %221 = vmatprep.subr.mxu0 %v287_v2  ;;  %v193_v21 = vld [vmem:[%s355_s2] ss:$0 sm:$0xff] }
  0x18   :  { %222 = vmatpush3.msra.mxu0 %v78_v7  ;;  %v194_v27 = vld [vmem:[%s357_s4] ss:$0 sm:$0xff] }
  0x19   :  { %223 = vmatprep.subr.mxu0 %v287_v2  ;;  %v195_v32 = vld [vmem:[%s358_s5] ss:$0 sm:$0xff] }
  0x1a   :  { %224 = vmatpush3.msra.mxu0 %v77_v8  ;;  %v196_v35 = vld [vmem:[#allocation2] ss:$0 sm:$0xff] }
  0x1b   :  { %225 = vmatprep.subr.mxu0 %v287_v2 }
  0x1c   :  { %226 = vmatpush3.msra.mxu0 %v76_v9 }
  0x1d   :  { %227 = vmatprep.subr.mxu0 %v287_v2 }
  0x1e   :  { %228 = vmatpush3.msra.mxu0 %v75_v10 }
  0x1f   :  { %229 = vmatprep.subr.mxu0 %v287_v2 }
  0x20   :  { %230 = vmatpush3.msra.mxu0 %v74_v11 }
  0x21   :  { %231 = vmatprep.subr.mxu0 %v287_v2 }
  0x22   :  { %232 = vmatpush3.msra.mxu0 %v73_v12 }
  0x23   :  { %233 = vmatprep.subr.mxu0 %v287_v2 }
  0x24   :  { %234 = vmatpush3.msra.mxu0 %v72_v13 }
  0x25   :  { %235 = vmatprep.subr.mxu0 %v287_v2 }
  0x26   :  { %236 = vmatpush3.msra.mxu0 %v71_v14 }
  0x27   :  { %237 = vmatprep.subr.mxu0 %v287_v2 }
  0x28   :  { %238 = vmatpush3.msra.mxu0 %v70_v15 }
  0x29   :  { %239 = vmatprep.subr.mxu0 %v287_v2 }
  0x2a   :  { %240 = vmatpush3.msra.mxu0 %v69_v16 }
  0x2b   :  { %241 = vmatprep.subr.mxu0 %v287_v2 }
  0x2c   :  { %242 = vmatpush3.msra.mxu0 %v68_v17 }
  0x2d   :  { %243 = vmatprep.subr.mxu0 %v287_v2 }
  0x2e   :  { %244 = vmatpush3.msra.mxu0 %v67_v18 }
  0x2f   :  { %245 = vmatprep.subr.mxu0 %v287_v2 }
  0x30   :  { %246 = vmatpush3.msra.mxu0 %v66_v19 }
  0x8d   :  { %v47_v22 = vpop.permute.xlu0 %46 }
  0x8e   :  { %v55_v23 = vmul.f32 %v192_v20, %v47_v22 }
  0x90   :  { %v63_v24 = vadd.f32 %v193_v21, %v55_v23 }
  0x92   :  { %v64_v25 = vmul.f32 0.01, %v63_v24 }
  0x94   :  { %v65_v26 = vmax.f32 %v63_v24, %v64_v25 }
  0x96   :  { %248 = vmatmul.mubr.f32.vlgmr.msra.gmra.mxu0 %v65_v26 }
 0x156   :  { %v155_v28 = vpop.f32.mrf.mxu0 }
 0x157   :  { %v156_v29 = vadd.f32 %v194_v27, %v155_v28 }
 0x158   :  { %v249_v30 = vpop.f32.mrf.mxu0 }
 0x159   :  { %v159_v31 = vmul.f32 0.01, %v156_v29 }
 0x15b   :  { %v160_v33 = vmax.f32 %v156_v29, %v159_v31 }
 0x15d   :  { %v168_v34 = vmul.f32 %v195_v32, %v160_v33 }
 0x15f   :  { %169 = vadd.xlane.f32.xlu0 %v168_v34 }
 0x1e8   :  { %v170_v36 = vpop.xlane.xlu0 %169 }
 0x1e9   :  { %v178_v37 = vadd.f32 %v196_v35, %v170_v36 }
 0x1eb   :  { %v197_v38 = vmul.f32 -1.442695, %v178_v37 }
 0x1ed   :  { %257 = vpow2.f32 %v197_v38 }
 0x1fa   :  { %v258_v39 = vpop.eup %257 }
 0x1fb   :  { %v182_v40 = vadd.f32 1.0, %v258_v39 }
 0x1fd   :  { %259 = vrcp.f32 %v182_v40 }
 0x20a   :  { %v260_v41 = vpop.eup %259 }
 0x20b   :  { %186 = vst.msk [vmem:[%s360_s7] sm:$0xff] %vm185_vm1, %v260_v41 }
 0x20c   :  { %191 = vsyncpa [#allocation4], 1 }

</bundles_post_ra>
